<compile_context>
chip_gen: v7x
topology: tpu7x:2x2x1
jax: 0.10.0
libtpu: 0.0.40
codegen_flags: <defaults>
</compile_context>

<pallas_src>
import functools
import math

import jax
import jax.numpy as jnp
from jax.experimental import pallas as pl
from jax.experimental.pallas import tpu as pltpu


_DEFAULT_BLOCK_BUDGET = 2 * 1024 * 1024     # ~2 MiB / block: HBM-roofline sweet spot
_SUBLANE = {1: 32, 2: 16, 4: 8, 8: 8}       # sublane packing by dtype itemsize


def _vmem_limit(est_bytes):
    """Raise the scoped-VMEM limit only when the chosen blocks need it."""
    if est_bytes <= 12 * 1024 * 1024:       # under every generation's default
        return None
    return min(int(est_bytes) * 5 // 4, 64 * 1024 * 1024)


# ----------------------------------------------------------------------------
# Pallas kernels
# ----------------------------------------------------------------------------
def _affine_kernel(x_ref, scale_ref, shift_ref, o_ref):
    """Folded BN:  out = x * scale + shift  on one lane-dense row tile.
    Partial last blocks are handled by Pallas (OOB writes discarded)."""
    x = x_ref[...].astype(jnp.float32)
    o_ref[...] = (x * scale_ref[...] + shift_ref[...]).astype(o_ref.dtype)


def _stats_kernel(x_ref, sum_ref, sq_ref, *, tile_m, rows, half):
    """Per-lane sum / sum-of-squares, accumulated across the row-block grid.
    Grid is (ncores, blocks_per_core); each core owns one partial-sum row.
    Rows beyond `rows` (Pallas partial-block garbage or duplicated clamped
    blocks) are masked to zero in-kernel."""
    p = pl.program_id(0)
    i = pl.program_id(1)

    @pl.when(i == 0)
    def _():
        sum_ref[...] = jnp.zeros_like(sum_ref)
        sq_ref[...] = jnp.zeros_like(sq_ref)

    blk = p * half + i                              # unclamped logical block idx
    r0 = blk * tile_m
    valid = jnp.clip(rows - r0, 0, tile_m)          # valid rows in this block
    row_id = jax.lax.broadcasted_iota(jnp.int32, x_ref.shape, 0)
    x = jnp.where(row_id < valid, x_ref[...].astype(jnp.float32), 0.0)

    sum_ref[...] += jnp.sum(x, axis=0)[None, None, :]
    sq_ref[...] += jnp.sum(x * x, axis=0)[None, None, :]


# ----------------------------------------------------------------------------
# Lane-dense packing plan (static shapes only)
# ----------------------------------------------------------------------------
def _pack_plan(n, c, itemsize, block_budget_bytes):
    """Choose (rep, rows, cols, tile_m): packed view is (rows, rep*c) with
    rep*c a multiple of 128 (lane-dense full-width stores) whenever a minimal
    sublane-aligned block fits the byte budget; tile_m from the byte budget."""
    sublane = _SUBLANE.get(itemsize, 8)
    if c % 128 == 0:
        rep = 1
    else:
        rep = 128 // math.gcd(c, 128)
        if rep * c * itemsize * sublane > block_budget_bytes:
            rep = 1   # TODO(synk): extreme-C fallback -> masked sub-128-lane stores
    cols = rep * c
    rows = -(-n // rep)                              # ceil(n / rep)
    tile_m = (block_budget_bytes // (cols * itemsize)) // sublane * sublane
    tile_m = max(sublane, tile_m)
    if tile_m >= rows:
        tile_m = rows                                # single block == full dim (legal)
    return rep, rows, cols, tile_m


def _pack(x2d, rep, rows):
    """Reshape to the lane-dense (rows, rep*c) view.  Only the <= rep-1 tail
    rows needed to make the reshape legal are ever padded."""
    n, c = x2d.shape
    n_pad = rows * rep
    if n_pad != n:
        x2d = jnp.pad(x2d, ((0, n_pad - n), (0, 0)))
    return x2d.reshape(rows, rep * c)


# ----------------------------------------------------------------------------
# pallas_call wrappers
# ----------------------------------------------------------------------------
def _apply_affine(xp, scale_row, shift_row, tile_m):
    rows, cols = xp.shape
    nb = pl.cdiv(rows, tile_m)
    itemsize = xp.dtype.itemsize
    est_vmem = 4 * tile_m * cols * itemsize + 4 * cols * 4   # 2x in + 2x out + scale/shift
    return pl.pallas_call(
        _affine_kernel,
        out_shape=jax.ShapeDtypeStruct((rows, cols), xp.dtype),
        grid=(nb,),
        in_specs=[
            pl.BlockSpec((tile_m, cols), lambda i: (i, 0)),   # x row tile
            pl.BlockSpec((1, cols), lambda i: (0, 0)),        # folded scale
            pl.BlockSpec((1, cols), lambda i: (0, 0)),        # folded shift
        ],
        out_specs=pl.BlockSpec((tile_m, cols), lambda i: (i, 0)),
        compiler_params=pltpu.CompilerParams(
            dimension_semantics=("parallel",),
            vmem_limit_bytes=_vmem_limit(est_vmem)),
        cost_estimate=pl.CostEstimate(
            flops=2 * rows * cols,
            transcendentals=0,
            bytes_accessed=2 * rows * cols * itemsize + 2 * cols * 4),
    )(xp, scale_row, shift_row)


def _batch_stats(xp, tile_m):
    rows, cols = xp.shape
    nb = pl.cdiv(rows, tile_m)
    ncores = 2 if nb >= 2 else 1          # split the row grid across 2 TCs (v7x)
    half = -(-nb // ncores)
    last = nb - 1
    itemsize = xp.dtype.itemsize

    kernel = functools.partial(_stats_kernel, tile_m=tile_m, rows=rows, half=half)
    in_map = lambda p, i: (jnp.minimum(p * half + i, last), 0)   # clamp odd-nb tail
    out_map = lambda p, i: (p, 0, 0)

    est_vmem = 2 * tile_m * cols * itemsize + 4 * cols * 4
    s, sq = pl.pallas_call(
        kernel,
        out_shape=(jax.ShapeDtypeStruct((ncores, 1, cols), jnp.float32),
                   jax.ShapeDtypeStruct((ncores, 1, cols), jnp.float32)),
        grid=(ncores, half),
        in_specs=[pl.BlockSpec((tile_m, cols), in_map)],
        out_specs=(pl.BlockSpec((1, 1, cols), out_map),
                   pl.BlockSpec((1, 1, cols), out_map)),
        compiler_params=pltpu.CompilerParams(
            dimension_semantics=("parallel", "arbitrary"),
            vmem_limit_bytes=_vmem_limit(est_vmem)),
        cost_estimate=pl.CostEstimate(
            flops=3 * rows * cols,
            transcendentals=0,
            bytes_accessed=rows * cols * itemsize + 2 * ncores * cols * 4),
    )(xp)
    # fold the per-core partials
    return s.reshape(ncores, cols).sum(axis=0), sq.reshape(ncores, cols).sum(axis=0)


# ----------------------------------------------------------------------------
# PointBatchNorm forward
# ----------------------------------------------------------------------------
@functools.partial(jax.jit,
                   static_argnames=("eps", "training", "block_budget_bytes"))
def point_batch_norm_forward(x, gamma, beta, running_mean, running_var,
                             *, eps=1e-5, training=False,
                             block_budget_bytes=_DEFAULT_BLOCK_BUDGET):
    orig_shape = x.shape
    if x.ndim == 3:
        b, n3, c = x.shape
        x2d = x.reshape(b * n3, c)
    elif x.ndim == 2:
        x2d = x
    else:
        raise NotImplementedError("PointBatchNorm supports 2-D / 3-D input only")

    n, c = x2d.shape
    itemsize = x2d.dtype.itemsize
    rep, rows, cols, tile_m = _pack_plan(n, c, itemsize, block_budget_bytes)
    xp = _pack(x2d, rep, rows)                       # (rows, rep*c), lane-dense

    if training:
        s, sq = _batch_stats(xp, tile_m)             # (rep*c,) each
        s = s.reshape(rep, c).sum(axis=0)            # per-channel sum
        sq = sq.reshape(rep, c).sum(axis=0)          # per-channel sum of squares
        mean = s / n
        var = jnp.maximum(sq / n - mean * mean, 0.0)  # biased var, clamp cancellation
    else:
        mean = running_mean.astype(jnp.float32)
        var = running_var.astype(jnp.float32)

    # fold BN into a single per-channel scale/shift
    scale = gamma.astype(jnp.float32) / jnp.sqrt(var + eps)
    shift = beta.astype(jnp.float32) - mean * scale
    scale_row = jnp.tile(scale.reshape(1, c), (1, rep))   # (1, rep*c) f32
    shift_row = jnp.tile(shift.reshape(1, c), (1, rep))

    yp = _apply_affine(xp, scale_row, shift_row, tile_m)
    y = yp.reshape(rows * rep, c)
    if rows * rep != n:                               # tiny rep-tail only
        y = y[:n]
    return y.reshape(orig_shape)


# ----------------------------------------------------------------------------
# Pure-JAX reference
# ----------------------------------------------------------------------------
def _reference(x, gamma, beta, running_mean, running_var,
               eps=1e-5, training=False):
    c = x.shape[-1]
    x2d = x.reshape(-1, c)
    if training:
        mean = jnp.mean(x2d, axis=0)
        var = jnp.var(x2d, axis=0)
    else:
        mean, var = running_mean, running_var
    y = (x2d - mean) / jnp.sqrt(var + eps) * gamma + beta
    return y.reshape(x.shape)


# ----------------------------------------------------------------------------
if __name__ == "__main__":
    key = jax.random.PRNGKey(0)
    k1, k2, k3, k4, k5, k6, k7 = jax.random.split(key, 7)

    C = 16
    gamma = 1.0 + 0.05 * jax.random.normal(k1, (C,), jnp.float32)
    beta = 0.05 * jax.random.normal(k2, (C,), jnp.float32)
    running_mean = 0.05 * jax.random.normal(k3, (C,), jnp.float32)
    running_var = 1.0 + 0.05 * jax.random.uniform(k4, (C,), jnp.float32)

    # 3-D input (B, N, C), eval mode (running statistics), single block
    x3 = jax.random.normal(k5, (2, 64, C), jnp.float32)
    y3 = point_batch_norm_forward(x3, gamma, beta, running_mean, running_var)

    # 2-D input (N, C) with N not a multiple of the lane-repack factor (tiny tail)
    x2 = jax.random.normal(k6, (37, C), jnp.float32)
    y2 = point_batch_norm_forward(x2, gamma, beta, running_mean, running_var)

    # training mode (batch statistics): small byte budget forces a multi-block
    # grid with an odd block count -> exercises the 2-core stats split, the
    # clamped block index, and partial-block masking in both kernels.
    xb = jax.random.normal(k7, (2, 1000, C), jnp.float32)
    yb = point_batch_norm_forward(xb, gamma, beta, running_mean, running_var,
                                  training=True, block_budget_bytes=20480)

    jax.block_until_ready((y3, y2, yb))

    r3 = _reference(x3, gamma, beta, running_mean, running_var)
    r2 = _reference(x2, gamma, beta, running_mean, running_var)
    rb = _reference(xb, gamma, beta, running_mean, running_var, training=True)

    assert y3.shape == x3.shape and y2.shape == x2.shape and yb.shape == xb.shape
    assert jnp.allclose(y3, r3, atol=1e-4, rtol=1e-4)
    assert jnp.allclose(y2, r2, atol=1e-4, rtol=1e-4)
    assert jnp.allclose(yb, rb, atol=1e-4, rtol=1e-4)

    print("KERNEL_OK")
</pallas_src>

<mosaic_0001>
module attributes {stable_mosaic.version = 11 : i64} {
  func.func @_affine_kernel(%arg0: i32, %arg1: memref<16x128xf32, #tpu.memory_space<vmem>>, %arg2: memref<1x128xf32, #tpu.memory_space<vmem>>, %arg3: memref<1x128xf32, #tpu.memory_space<vmem>>, %arg4: memref<16x128xf32, #tpu.memory_space<vmem>>) attributes {dimension_semantics = [#tpu.dimension_semantics<parallel>], iteration_bounds = array<i64: 1>, scalar_prefetch = 0 : i64, scratch_operands = 0 : i64, tpu.core_type = #tpu.core_type<tc>, window_params = [{transform_indices = @transform_0, window_bounds = array<i64: 16, 128>}, {pipeline_mode = #tpu.pipeline_mode<synchronous>, transform_indices = @transform_1, window_bounds = array<i64: 1, 128>}, {pipeline_mode = #tpu.pipeline_mode<synchronous>, transform_indices = @transform_2, window_bounds = array<i64: 1, 128>}, {transform_indices = @transform_3, window_bounds = array<i64: 16, 128>}]} {
    %c0 = arith.constant 0 : index
    %c0_0 = arith.constant 0 : index
    %0 = vector.load %arg1[%c0, %c0_0] : memref<16x128xf32, #tpu.memory_space<vmem>>, vector<16x128xf32>
    %c0_1 = arith.constant 0 : index
    %c0_2 = arith.constant 0 : index
    %1 = vector.load %arg2[%c0_1, %c0_2] : memref<1x128xf32, #tpu.memory_space<vmem>>, vector<1x128xf32>
    %2 = vector.broadcast %1 : vector<1x128xf32> to vector<16x128xf32>
    %3 = arith.mulf %0, %2 : vector<16x128xf32>
    %c0_3 = arith.constant 0 : index
    %c0_4 = arith.constant 0 : index
    %4 = vector.load %arg3[%c0_3, %c0_4] : memref<1x128xf32, #tpu.memory_space<vmem>>, vector<1x128xf32>
    %5 = vector.broadcast %4 : vector<1x128xf32> to vector<16x128xf32>
    %6 = arith.addf %3, %5 : vector<16x128xf32>
    %c0_5 = arith.constant 0 : index
    %c0_6 = arith.constant 0 : index
    %7 = vector.load %arg4[%c0_5, %c0_6] : memref<16x128xf32, #tpu.memory_space<vmem>>, vector<16x128xf32>
    tpu.vector_store %arg4[%c0_5, %c0_6], %6 {strides = array<i32>} : memref<16x128xf32, #tpu.memory_space<vmem>>, vector<16x128xf32>,
    return
  }
  func.func @transform_0(%arg0: i32) -> (i32, i32) {
    %c0_i32 = arith.constant 0 : i32
    %c0_i32_0 = arith.constant 0 : i32
    return %arg0, %c0_i32 : i32, i32
  }
  func.func @transform_1(%arg0: i32) -> (i32, i32) {
    %c0_i32 = arith.constant 0 : i32
    %c0_i32_0 = arith.constant 0 : i32
    %c0_i32_1 = arith.constant 0 : i32
    return %c0_i32, %c0_i32_0 : i32, i32
  }
  func.func @transform_2(%arg0: i32) -> (i32, i32) {
    %c0_i32 = arith.constant 0 : i32
    %c0_i32_0 = arith.constant 0 : i32
    %c0_i32_1 = arith.constant 0 : i32
    return %c0_i32, %c0_i32_0 : i32, i32
  }
  func.func @transform_3(%arg0: i32) -> (i32, i32) {
    %c0_i32 = arith.constant 0 : i32
    %c0_i32_0 = arith.constant 0 : i32
    return %arg0, %c0_i32 : i32, i32
  }
}

</mosaic_0001>

<bundles_post_ra>
// kernel: point_batch_norm_forward.1
= control target key start
LH: loop header
LB: loop body
LE: loop exit
PB: predicated region body
PF: predicated region fallthrough
CT: control target
= control target key end

     0   :  { %s80_s0 = inlined_call_operand.vmem [shape: f32[16,128], index: 0, kind: input, shape index: {}]   ;;  %s81_s1 = inlined_call_operand.vmem [shape: f32[1,128], index: 1, kind: input, shape index: {}]   ;;  %s82_s2 = inlined_call_operand.vmem [shape: f32[1,128], index: 2, kind: input, shape index: {}]   ;;  %s83_s3 = inlined_call_operand.vmem [shape: f32[16,128], index: 3, kind: output, shape index: {}]  }
   0x1   :  { %v14_v0 = vld [vmem:[%s80_s0] sm:$0xff]  ;;  %v15_v4 = vld [vmem:[%s80_s0 + $0x8] sm:$0xff] }
   0x2   :  { %v40_v1 = vld [vmem:[%s81_s1] ss:$0 sm:$0xff] }
   0x3   :  { %v41_v2 = vld [vmem:[%s82_s2] ss:$0 sm:$0xff]  ;;  %v23_v3 = vmul.f32 %v40_v1, %v14_v0  ;;  %v24_v5 = vmul.f32 %v40_v1, %v15_v4 }
   0x5   :  { %v32_v6 = vadd.f32 %v41_v2, %v23_v3  ;;  %v33_v7 = vadd.f32 %v41_v2, %v24_v5 }
   0x7   :  { %34 = vst [vmem:[%s83_s3] sm:$0xff] %v32_v6  ;;  %35 = vst [vmem:[%s83_s3 + $0x8] sm:$0xff] %v33_v7 }

</bundles_post_ra>
